<compile_context>
chip_gen: v6e
topology: v6e:2x2x1
jax: 0.10.0
libtpu: 0.0.40
codegen_flags: <defaults>
</compile_context>

<pallas_src>
import jax
import jax.numpy as jnp
from jax.experimental import pallas as pl
from jax.experimental.pallas import tpu as pltpu

LANE = 128  # vreg lane width


def _round_up(n, m):
    return ((n + m - 1) // m) * m


def placing_net_kernel(x_ref, w1_ref, b1_ref, w2_ref, b2_ref, w3_ref, b3_ref,
                       out_ref):
    x = x_ref[...]                                    # f32 [TILE_B, num_in]

    # fc1 + ReLU: f32 x against f32 w1 (K = num_in, unpadded; N padded to 128)
    h1 = jnp.dot(x, w1_ref[...], preferred_element_type=jnp.float32)
    h1 = jnp.maximum(h1 + b1_ref[...], 0.0)

    # fc2 + Sigmoid (bf16 MXU operands, f32 accumulation, f32 epilogue)
    h2 = jnp.dot(h1.astype(jnp.bfloat16), w2_ref[...],
                 preferred_element_type=jnp.float32)
    h2 = jax.nn.sigmoid(h2 + b2_ref[...])

    # fc3 + Sigmoid
    h3 = jnp.dot(h2.astype(jnp.bfloat16), w3_ref[...],
                 preferred_element_type=jnp.float32)
    out_ref[...] = jax.nn.sigmoid(h3 + b3_ref[...]).astype(out_ref.dtype)


def prepare_params(params):
    """Pad feature dims to 128 multiples.  Call ONCE outside the hot path.

    w1 stays f32 and is padded only on its OUTPUT dim (K = num_in, so the f32
    input x can be consumed unpadded).  w2/w3 are zero-padded on both dims and
    cast to bf16 for the MXU.  Biases stay f32, shape [1, out_pad].

    Correctness of padding (exact, by construction with jnp.zeros):
      padded h1 cols  = ReLU(0 + 0) = 0
      padded h2 cols  = sigmoid(0)  = 0.5, but they only multiply the padded
                        (all-zero) rows of w3, so real outputs are unaffected
      padded out cols = sigmoid(0)  = 0.5, sliced off in the wrapper
    """
    def pad_out_only(w):                       # [num_in, hidden] -> f32
        c = _round_up(w.shape[1], LANE)
        return jnp.zeros((w.shape[0], c), jnp.float32).at[:, :w.shape[1]].set(w)

    def pad_w(w):                              # -> bf16, both dims padded
        r, c = _round_up(w.shape[0], LANE), _round_up(w.shape[1], LANE)
        wp = jnp.zeros((r, c), jnp.float32).at[:w.shape[0], :w.shape[1]].set(w)
        return wp.astype(jnp.bfloat16)

    def pad_b(b):
        c = _round_up(b.shape[1], LANE)
        return jnp.zeros((1, c), jnp.float32).at[:, :b.shape[1]].set(b)

    return {
        "w1": pad_out_only(params["w1"]), "b1": pad_b(params["b1"]),
        "w2": pad_w(params["w2"]),        "b2": pad_b(params["b2"]),
        "w3": pad_w(params["w3"]),        "b3": pad_b(params["b3"]),
    }


def placing_net_forward(x, padded_params, num_out, tile_b=512):
    """x: [B, num_in] f32 (unpadded). padded_params: output of prepare_params."""
    w1, b1 = padded_params["w1"], padded_params["b1"]
    w2, b2 = padded_params["w2"], padded_params["b2"]
    w3, b3 = padded_params["w3"], padded_params["b3"]
    out_p = w3.shape[1]

    B, num_in = x.shape

    # Batch tile: large (default 512) to amortize per-step overhead, but sized
    # from B so padding waste is bounded; force >= 2 grid steps when there is
    # enough batch so v7x's second TensorCore gets work.
    b8 = _round_up(B, 8)
    tb = max(8, min(_round_up(tile_b, 8), b8))
    if b8 >= 16 and tb >= b8:
        tb = _round_up((b8 + 1) // 2, 8)
    b_pad = _round_up(B, tb)

    # Only sublane-pad the batch dim (no feature-dim pad, no dtype cast).
    if b_pad != B:
        xp = jnp.zeros((b_pad, num_in), x.dtype).at[:B, :].set(x)
    else:
        xp = x

    full = lambda a: pl.BlockSpec(a.shape, lambda i: (0, 0))

    out_padded = pl.pallas_call(
        placing_net_kernel,
        out_shape=jax.ShapeDtypeStruct((b_pad, out_p), jnp.bfloat16),
        grid=(b_pad // tb,),
        in_specs=[pl.BlockSpec((tb, num_in), lambda i: (i, 0)),   # x, f32, 24 cols
                  full(w1), full(b1), full(w2), full(b2), full(w3), full(b3)],
        out_specs=pl.BlockSpec((tb, out_p), lambda i: (i, 0)),
        compiler_params=pltpu.CompilerParams(
            dimension_semantics=("parallel",)),
    )(xp, w1, b1, w2, b2, w3, b3)

    return out_padded[:B, :num_out].astype(jnp.float32)


def init_params(key, num_in, num_out, hidden_dim):
    """Deterministic synthetic init (same shapes as the torch module)."""
    ks = jax.random.split(key, 6)

    def lin(kw, kb, fan_in, fan_out):
        bound = 1.0 / jnp.sqrt(fan_in)
        w = jax.random.uniform(kw, (fan_in, fan_out), jnp.float32, -bound, bound)
        b = jax.random.uniform(kb, (1, fan_out), jnp.float32, -bound, bound)
        return w, b

    w1, b1 = lin(ks[0], ks[1], num_in, hidden_dim)
    w2, b2 = lin(ks[2], ks[3], hidden_dim, hidden_dim)
    w3, b3 = lin(ks[4], ks[5], hidden_dim, num_out)
    return {"w1": w1, "b1": b1, "w2": w2, "b2": b2, "w3": w3, "b3": b3}


def reference_forward(x, p):
    h1 = jnp.maximum(x @ p["w1"] + p["b1"], 0.0)
    h2 = jax.nn.sigmoid(h1 @ p["w2"] + p["b2"])
    return jax.nn.sigmoid(h2 @ p["w3"] + p["b3"])


if __name__ == "__main__":
    B, num_in, hidden_dim, num_out = 8, 24, 32, 10

    key = jax.random.PRNGKey(0)
    kx, kp = jax.random.split(key)
    x = jax.random.normal(kx, (B, num_in), jnp.float32)
    params = init_params(kp, num_in, num_out, hidden_dim)

    padded_params = prepare_params(params)          # once, outside hot path

    out = placing_net_forward(x, padded_params, num_out)
    out = jax.block_until_ready(out)

    ref = reference_forward(x, params)              # full-f32 reference
    assert out.shape == (B, num_out)
    # bf16 weights/activations on the MXU (f32 accumulation) and a bf16 output
    # store => allow small rounding slack vs the f32 reference; outputs are
    # post-sigmoid in [0, 1].
    assert jnp.allclose(out, ref, atol=2e-2, rtol=0.0), "mismatch vs reference"

    print("KERNEL_OK")
</pallas_src>

<mosaic_0001>
module attributes {stable_mosaic.version = 11 : i64} {
  func.func @placing_net_kernel(%arg0: i32, %arg1: memref<8x24xf32, #tpu.memory_space<vmem>>, %arg2: memref<24x128xf32, #tpu.memory_space<vmem>>, %arg3: memref<1x128xf32, #tpu.memory_space<vmem>>, %arg4: memref<128x128xbf16, #tpu.memory_space<vmem>>, %arg5: memref<1x128xf32, #tpu.memory_space<vmem>>, %arg6: memref<128x128xbf16, #tpu.memory_space<vmem>>, %arg7: memref<1x128xf32, #tpu.memory_space<vmem>>, %arg8: memref<8x128xbf16, #tpu.memory_space<vmem>>) attributes {dimension_semantics = [#tpu.dimension_semantics<parallel>], iteration_bounds = array<i64: 1>, scalar_prefetch = 0 : i64, scratch_operands = 0 : i64, tpu.core_type = #tpu.core_type<tc>, window_params = [{transform_indices = @transform_0, window_bounds = array<i64: 8, 24>}, {pipeline_mode = #tpu.pipeline_mode<synchronous>, transform_indices = @transform_1, window_bounds = array<i64: 24, 128>}, {pipeline_mode = #tpu.pipeline_mode<synchronous>, transform_indices = @transform_2, window_bounds = array<i64: 1, 128>}, {pipeline_mode = #tpu.pipeline_mode<synchronous>, transform_indices = @transform_3, window_bounds = array<i64: 128, 128>}, {pipeline_mode = #tpu.pipeline_mode<synchronous>, transform_indices = @transform_4, window_bounds = array<i64: 1, 128>}, {pipeline_mode = #tpu.pipeline_mode<synchronous>, transform_indices = @transform_5, window_bounds = array<i64: 128, 128>}, {pipeline_mode = #tpu.pipeline_mode<synchronous>, transform_indices = @transform_6, window_bounds = array<i64: 1, 128>}, {transform_indices = @transform_7, window_bounds = array<i64: 8, 128>}]} {
    %c0 = arith.constant 0 : index
    %c0_0 = arith.constant 0 : index
    %0 = vector.load %arg1[%c0, %c0_0] : memref<8x24xf32, #tpu.memory_space<vmem>>, vector<8x24xf32>
    %c0_1 = arith.constant 0 : index
    %c0_2 = arith.constant 0 : index
    %1 = vector.load %arg2[%c0_1, %c0_2] : memref<24x128xf32, #tpu.memory_space<vmem>>, vector<24x128xf32>
    %cst = arith.constant dense<0.000000e+00> : vector<8x128xf32>
    %2 = tpu.matmul %0, %1, %cst {dimension_numbers = #tpu.dot_dimension_numbers<[1], [0], [0], [1], [0, 0, 1, 1], [], []>} : vector<8x24xf32>, vector<24x128xf32>, vector<8x128xf32> -> vector<8x128xf32>
    %c0_3 = arith.constant 0 : index
    %c0_4 = arith.constant 0 : index
    %3 = vector.load %arg3[%c0_3, %c0_4] : memref<1x128xf32, #tpu.memory_space<vmem>>, vector<1x128xf32>
    %4 = vector.broadcast %3 : vector<1x128xf32> to vector<8x128xf32>
    %5 = arith.addf %2, %4 : vector<8x128xf32>
    %cst_5 = arith.constant 0.000000e+00 : f32
    %6 = vector.broadcast %cst_5 : f32 to vector<8x128xf32>
    %7 = arith.maximumf %5, %6 : vector<8x128xf32>
    %8 = arith.truncf %7 : vector<8x128xf32> to vector<8x128xbf16>
    %c0_6 = arith.constant 0 : index
    %c0_7 = arith.constant 0 : index
    %9 = vector.load %arg4[%c0_6, %c0_7] : memref<128x128xbf16, #tpu.memory_space<vmem>>, vector<128x128xbf16>
    %cst_8 = arith.constant dense<0.000000e+00> : vector<8x128xf32>
    %10 = tpu.matmul %8, %9, %cst_8 {dimension_numbers = #tpu.dot_dimension_numbers<[1], [0], [0], [1], [0, 0, 1, 1], [], []>} : vector<8x128xbf16>, vector<128x128xbf16>, vector<8x128xf32> -> vector<8x128xf32>
    %c0_9 = arith.constant 0 : index
    %c0_10 = arith.constant 0 : index
    %11 = vector.load %arg5[%c0_9, %c0_10] : memref<1x128xf32, #tpu.memory_space<vmem>>, vector<1x128xf32>
    %12 = vector.broadcast %11 : vector<1x128xf32> to vector<8x128xf32>
    %13 = arith.addf %10, %12 : vector<8x128xf32>
    %14 = arith.negf %13 : vector<8x128xf32>
    %15 = math.exp %14 : vector<8x128xf32>
    %cst_11 = arith.constant 1.000000e+00 : f32
    %16 = vector.broadcast %cst_11 : f32 to vector<8x128xf32>
    %17 = arith.addf %16, %15 : vector<8x128xf32>
    %18 = arith.divf %16, %17 : vector<8x128xf32>
    %19 = arith.truncf %18 : vector<8x128xf32> to vector<8x128xbf16>
    %c0_12 = arith.constant 0 : index
    %c0_13 = arith.constant 0 : index
    %20 = vector.load %arg6[%c0_12, %c0_13] : memref<128x128xbf16, #tpu.memory_space<vmem>>, vector<128x128xbf16>
    %cst_14 = arith.constant dense<0.000000e+00> : vector<8x128xf32>
    %21 = tpu.matmul %19, %20, %cst_14 {dimension_numbers = #tpu.dot_dimension_numbers<[1], [0], [0], [1], [0, 0, 1, 1], [], []>} : vector<8x128xbf16>, vector<128x128xbf16>, vector<8x128xf32> -> vector<8x128xf32>
    %c0_15 = arith.constant 0 : index
    %c0_16 = arith.constant 0 : index
    %22 = vector.load %arg7[%c0_15, %c0_16] : memref<1x128xf32, #tpu.memory_space<vmem>>, vector<1x128xf32>
    %23 = vector.broadcast %22 : vector<1x128xf32> to vector<8x128xf32>
    %24 = arith.addf %21, %23 : vector<8x128xf32>
    %25 = arith.negf %24 : vector<8x128xf32>
    %26 = math.exp %25 : vector<8x128xf32>
    %cst_17 = arith.constant 1.000000e+00 : f32
    %27 = vector.broadcast %cst_17 : f32 to vector<8x128xf32>
    %28 = arith.addf %27, %26 : vector<8x128xf32>
    %29 = arith.divf %27, %28 : vector<8x128xf32>
    %30 = arith.truncf %29 : vector<8x128xf32> to vector<8x128xbf16>
    %c0_18 = arith.constant 0 : index
    %c0_19 = arith.constant 0 : index
    %31 = vector.load %arg8[%c0_18, %c0_19] : memref<8x128xbf16, #tpu.memory_space<vmem>>, vector<8x128xbf16>
    tpu.vector_store %arg8[%c0_18, %c0_19], %30 {strides = array<i32>} : memref<8x128xbf16, #tpu.memory_space<vmem>>, vector<8x128xbf16>,
    return
  }
  func.func @transform_0(%arg0: i32) -> (i32, i32) {
    %c0_i32 = arith.constant 0 : i32
    %c0_i32_0 = arith.constant 0 : i32
    return %arg0, %c0_i32 : i32, i32
  }
  func.func @transform_1(%arg0: i32) -> (i32, i32) {
    %c0_i32 = arith.constant 0 : i32
    %c0_i32_0 = arith.constant 0 : i32
    %c0_i32_1 = arith.constant 0 : i32
    return %c0_i32, %c0_i32_0 : i32, i32
  }
  func.func @transform_2(%arg0: i32) -> (i32, i32) {
    %c0_i32 = arith.constant 0 : i32
    %c0_i32_0 = arith.constant 0 : i32
    %c0_i32_1 = arith.constant 0 : i32
    return %c0_i32, %c0_i32_0 : i32, i32
  }
  func.func @transform_3(%arg0: i32) -> (i32, i32) {
    %c0_i32 = arith.constant 0 : i32
    %c0_i32_0 = arith.constant 0 : i32
    %c0_i32_1 = arith.constant 0 : i32
    return %c0_i32, %c0_i32_0 : i32, i32
  }
  func.func @transform_4(%arg0: i32) -> (i32, i32) {
    %c0_i32 = arith.constant 0 : i32
    %c0_i32_0 = arith.constant 0 : i32
    %c0_i32_1 = arith.constant 0 : i32
    return %c0_i32, %c0_i32_0 : i32, i32
  }
  func.func @transform_5(%arg0: i32) -> (i32, i32) {
    %c0_i32 = arith.constant 0 : i32
    %c0_i32_0 = arith.constant 0 : i32
    %c0_i32_1 = arith.constant 0 : i32
    return %c0_i32, %c0_i32_0 : i32, i32
  }
  func.func @transform_6(%arg0: i32) -> (i32, i32) {
    %c0_i32 = arith.constant 0 : i32
    %c0_i32_0 = arith.constant 0 : i32
    %c0_i32_1 = arith.constant 0 : i32
    return %c0_i32, %c0_i32_0 : i32, i32
  }
  func.func @transform_7(%arg0: i32) -> (i32, i32) {
    %c0_i32 = arith.constant 0 : i32
    %c0_i32_0 = arith.constant 0 : i32
    return %arg0, %c0_i32 : i32, i32
  }
}

</mosaic_0001>

<bundles_post_ra>
// kernel: tpu_custom_call.1
= control target key start
LH: loop header
LB: loop body
LE: loop exit
PB: predicated region body
PF: predicated region fallthrough
CT: control target
= control target key end

     0   :  { %12 = vsyncpa [#allocation3], 0  ;;  %s758_s0 = inlined_call_operand.hbm [shape: f32[8,24], index: 0, kind: input, shape index: {}]   ;;  %s759_s1 = inlined_call_operand.hbm [shape: f32[24,128], index: 1, kind: input, shape index: {}]   ;;  %s760_s2 = inlined_call_operand.vmem [shape: f32[1,128], index: 2, kind: input, shape index: {}]   ;;  %s761_s3 = inlined_call_operand.hbm [shape: bf16[128,128], index: 3, kind: input, shape index: {}]   ;;  %s762_s4 = inlined_call_operand.vmem [shape: f32[1,128], index: 4, kind: input, shape index: {}]   ;;  %s763_s5 = inlined_call_operand.hbm [shape: bf16[128,128], index: 5, kind: input, shape index: {}]   ;;  %s764_s6 = inlined_call_operand.vmem [shape: f32[1,128], index: 6, kind: input, shape index: {}]   ;;  %s765_s7 = inlined_call_operand.hbm [shape: bf16[8,128], index: 7, kind: output, shape index: {}]  }
   0x1   :  { %13 = vsyncpa [#allocation6], 0 }
   0x2   :  { %14 = vsyncpa [#allocation9], 0 }
   0x3   :  { %15 = vsyncpa [#allocation4], 0  ;;  %s658_s24 = smov [#allocation5]  }
   0x4   :  { %s31_s25 = sshll.u32 %s658_s24, 4  ;;  %s32_s25 = int_to_ptr.vmem [resolvable:$true] %s31_s25 }
   0x5   :  { %s558_s26 = scalar_lea.vmem %s32_s25, 384  ;;  %p563_p1 = scmp.lt.s32.totalorder %s32_s25, %s32_s25 }
   0x6   :  { %p559_p0 = scmp.ne.s32.totalorder %s32_s25, %s558_s26  ;;  %p564_p2 = scmp.lt.s32.totalorder %s558_s26, %s558_s26 }
   0x8   :  { %p565_p3 = por %p564_p2, %p563_p1 }
   0xa   :  { %p566_p4 = pnand %p565_p3, %p559_p0 }
   0xc   :  { %569 = shalt.err (!%p566_p4)
}
   0xd   :  { %s659_s27 = smov 128   ;;  %s660_s28 = smov 8  }
   0xe   :  { %37 = dma.hbm_to_vmem [thread:$0]  %s759_s1, 384, %s32_s25, [#allocation6], %s659_s27, %s659_s27, %s660_s28  }
   0xf   :  { %s661_s8 = smov [#allocation2]   ;;  %s662_s10 = smov [#allocation7]  }
  0x10   :  { %s22_s9 = sshll.u32 %s661_s8, 4  ;;  %s45_s11 = sshll.u32 %s662_s10, 4  ;;  %s23_s9 = int_to_ptr.vmem [resolvable:$true] %s22_s9  ;;  %s46_s11 = int_to_ptr.vmem [resolvable:$true] %s45_s11 }
  0x11   :  { %s578_s12 = scalar_lea.vmem %s23_s9, 128  ;;  %p583_p6 = scmp.lt.s32.totalorder %s23_s9, %s23_s9 }
  0x12   :  { %p579_p5 = scmp.ne.s32.totalorder %s23_s9, %s578_s12  ;;  %p584_p7 = scmp.lt.s32.totalorder %s578_s12, %s578_s12 }
  0x14   :  { %p585_p8 = por %p584_p7, %p583_p6 }
  0x16   :  { %p586_p9 = pnand %p585_p8, %p579_p5 }
  0x18   :  { %589 = shalt.err (!%p586_p9)
}
  0x19   :  { %25 = dma.hbm_to_vmem [thread:$0]  %s758_s0, 128, %s23_s9, [#allocation3]  }
  0x1a   :  { %s598_s15 = scalar_lea.vmem %s46_s11, 1024  ;;  %p603_p11 = scmp.lt.s32.totalorder %s46_s11, %s46_s11 }
  0x1b   :  { %p599_p10 = scmp.ne.s32.totalorder %s46_s11, %s598_s15  ;;  %p604_p12 = scmp.lt.s32.totalorder %s598_s15, %s598_s15 }
  0x1d   :  { %p605_p13 = por %p604_p12, %p603_p11 }
  0x1f   :  { %p606_p0 = pnand %p605_p13, %p599_p10 }
  0x21   :  { %609 = shalt.err (!%p606_p0)
}
  0x22   :  { %s663_s1 = smov 64   ;;  %s664_s16 = smov 4  }
  0x23   :  { %51 = dma.hbm_to_vmem [thread:$0]  %s761_s3, 1024, %s46_s11, [#allocation6], %s663_s1, %s663_s1, %s664_s16  }
  0x24   :  { %s665_s19 = smov [#allocation8]  }
  0x25   :  { %s59_s20 = sshll.u32 %s665_s19, 4  ;;  %s60_s20 = int_to_ptr.vmem [resolvable:$true] %s59_s20 }
  0x26   :  { %s618_s21 = scalar_lea.vmem %s60_s20, 1024  ;;  %p623_p2 = scmp.lt.s32.totalorder %s60_s20, %s60_s20 }
  0x27   :  { %p619_p1 = scmp.ne.s32.totalorder %s60_s20, %s618_s21  ;;  %p624_p3 = scmp.lt.s32.totalorder %s618_s21, %s618_s21 }
  0x29   :  { %p625_p4 = por %p624_p3, %p623_p2 }
  0x2b   :  { %p626_p5 = pnand %p625_p4, %p619_p1 }
  0x2d   :  { %629 = shalt.err (!%p626_p5)
}
  0x2e   :  { %65 = dma.hbm_to_vmem [thread:$0]  %s763_s5, 1024, %s60_s20, [#allocation9], %s663_s1, %s663_s1, %s664_s16  }
  0x2f   :  { %650 = dma.done.wait [#allocation3], 128  }
  0x30   :  { %651 = vsyncadd [#allocation3], 4294967168 }
  0x31   :  { %652 = dma.done.wait [#allocation6], 1408  }
  0x32   :  { %653 = vsyncadd [#allocation6], 4294965888 }
  0x33   :  { %654 = dma.done.wait [#allocation9], 1024  }
  0x34   :  { %655 = vsyncadd [#allocation9], 4294966272  ;;  %v666_v0 = vmov 0.0   ;;  %vm667_vm0 = vmmov 0   ;;  %v84_v1 = vld [vmem:[#allocation5 + $0x10] sm:$0xff]  ;;  %v83_v2 = vld [vmem:[#allocation5 + $0x8] sm:$0xff] }
  0x35   :  { %466 = vmatprep.subr.mxu0 %v666_v0  ;;  %472 = vmatprep.mubr.msk.f32.mxu0 %vm667_vm0, %v666_v0  ;;  %v82_v3 = vld [vmem:[#allocation5] sm:$0xff]  ;;  %v526_v4 = vld [vmem:[#allocation7 + $0x38] sm:$0xff]   ;;  %v81_v5 = vld [vmem:[#allocation2] sm:$0xff]  ;;  %vm92_vm1 = vcmask 195584  }
  0x36   :  { %475 = vmatprep.subr.bf16.mxu1 %v666_v0  ;;  %491 = vmatprep.mubr.msk.bf16.mxu1 %vm667_vm0, %v666_v0  ;;  %v527_v6 = vld [vmem:[#allocation7 + $0x30] sm:$0xff]   ;;  %v528_v7 = vld [vmem:[#allocation7 + $0x28] sm:$0xff]   ;;  %v529_v8 = vld [vmem:[#allocation7 + $0x20] sm:$0xff]  }
  0x37   :  { %467 = vmatpush3.msra.mxu0 %v84_v1  ;;  %476 = vmatpush3.bf16.msra.mxu1 %v526_v4  ;;  %v530_v9 = vld [vmem:[#allocation7 + $0x18] sm:$0xff]   ;;  %v531_v10 = vld [vmem:[#allocation7 + $0x10] sm:$0xff]   ;;  %v532_v11 = vld [vmem:[#allocation7 + $0x8] sm:$0xff]  }
  0x38   :  { %468 = vmatprep.subr.mxu0 %v666_v0  ;;  %477 = vmatprep.subr.bf16.mxu1 %v666_v0  ;;  %v533_v12 = vld [vmem:[#allocation7] sm:$0xff]   ;;  %v534_v19 = vld [vmem:[#allocation8 + $0x38] sm:$0xff]   ;;  %v535_v20 = vld [vmem:[#allocation8 + $0x30] sm:$0xff]  }
  0x39   :  { %469 = vmatpush3.msra.mxu0 %v83_v2  ;;  %v422_v13 = vld [vmem:[%s760_s2] ss:$0 sm:$0xff]  ;;  %v536_v21 = vld [vmem:[#allocation8 + $0x28] sm:$0xff]   ;;  %v538_v23 = vld [vmem:[#allocation8 + $0x18] sm:$0xff]  }
  0x3a   :  { %470 = vmatprep.subr.mxu0 %v666_v0  ;;  %v537_v22 = vld [vmem:[#allocation8 + $0x20] sm:$0xff]   ;;  %v539_v24 = vld [vmem:[#allocation8 + $0x10] sm:$0xff]   ;;  %v540_v25 = vld [vmem:[#allocation8 + $0x8] sm:$0xff]  }
  0x3b   :  { %471 = vmatpush3.msra.mxu0 %v82_v3  ;;  %478 = vmatpush3.bf16.msra.mxu1 %v527_v6  ;;  %v541_v26 = vld [vmem:[#allocation8] sm:$0xff]  }
  0x3c   :  { %473 = vmatmul.mubr.msk.f32.vlgmr.msra.gmra.mxu0 %vm92_vm1, %v81_v5  ;;  %495 = vmatprep.subr.bf16.mxu0 %v666_v0  ;;  %v424_v27 = vld [vmem:[%s762_s4] ss:$0 sm:$0xff]  ;;  %s668_s4 = smov [#allocation10]  }
  0x3d   :  { %511 = vmatprep.mubr.msk.bf16.mxu0 %vm667_vm0, %v666_v0  ;;  %479 = vmatprep.subr.bf16.mxu1 %v666_v0  ;;  %v434_v38 = vld [vmem:[%s764_s6] ss:$0 sm:$0xff]  ;;  %s411_s26 = sshll.u32 %s668_s4, 4  ;;  %s412_s26 = int_to_ptr.vmem [resolvable:$true] %s411_s26 }
  0x3e   :  { %496 = vmatpush3.bf16.msra.mxu0 %v534_v19  ;;  %s630_s27 = scalar_lea.vmem %s412_s26, 64  ;;  %p635_p7 = scmp.lt.s32.totalorder %s412_s26, %s412_s26 }
  0x3f   :  { %480 = vmatpush3.bf16.msra.mxu1 %v528_v7  ;;  %497 = vmatprep.subr.bf16.mxu0 %v666_v0  ;;  %p631_p6 = scmp.ne.s32.totalorder %s412_s26, %s630_s27  ;;  %p636_p8 = scmp.lt.s32.totalorder %s630_s27, %s630_s27 }
  0x40   :  { %481 = vmatprep.subr.bf16.mxu1 %v666_v0 }
  0x41   :  { %p637_p9 = por %p636_p8, %p635_p7 }
  0x42   :  { %498 = vmatpush3.bf16.msra.mxu0 %v535_v20 }
  0x43   :  { %482 = vmatpush3.bf16.msra.mxu1 %v529_v8  ;;  %499 = vmatprep.subr.bf16.mxu0 %v666_v0  ;;  %p638_p10 = pnand %p637_p9, %p631_p6 }
  0x44   :  { %483 = vmatprep.subr.bf16.mxu1 %v666_v0 }
  0x46   :  { %500 = vmatpush3.bf16.msra.mxu0 %v536_v21 }
  0x47   :  { %484 = vmatpush3.bf16.msra.mxu1 %v530_v9  ;;  %501 = vmatprep.subr.bf16.mxu0 %v666_v0 }
  0x48   :  { %485 = vmatprep.subr.bf16.mxu1 %v666_v0 }
  0x4a   :  { %502 = vmatpush3.bf16.msra.mxu0 %v537_v22 }
  0x4b   :  { %486 = vmatpush3.bf16.msra.mxu1 %v531_v10  ;;  %503 = vmatprep.subr.bf16.mxu0 %v666_v0 }
  0x4c   :  { %487 = vmatprep.subr.bf16.mxu1 %v666_v0 }
  0x4e   :  { %504 = vmatpush3.bf16.msra.mxu0 %v538_v23 }
  0x4f   :  { %488 = vmatpush3.bf16.msra.mxu1 %v532_v11  ;;  %505 = vmatprep.subr.bf16.mxu0 %v666_v0 }
  0x50   :  { %489 = vmatprep.subr.bf16.mxu1 %v666_v0 }
  0x52   :  { %506 = vmatpush3.bf16.msra.mxu0 %v539_v24 }
  0x53   :  { %490 = vmatpush3.bf16.msra.mxu1 %v533_v12  ;;  %507 = vmatprep.subr.bf16.mxu0 %v666_v0 }
  0x56   :  { %508 = vmatpush3.bf16.msra.mxu0 %v540_v25 }
  0x57   :  { %509 = vmatprep.subr.bf16.mxu0 %v666_v0 }
  0x5a   :  { %510 = vmatpush3.bf16.msra.mxu0 %v541_v26 }
  0xfc   :  { %v162_v14 = vpop.f32.mrf.mxu0 }
  0xfd   :  { %v163_v15 = vadd.f32 %v422_v13, %v162_v14 }
  0xfe   :  { %v474_v16 = vpop.f32.mrf.mxu0 }
  0xff   :  { %v166_v17 = vmax.f32 %v163_v15, 0.0 }
 0x101   :  { %v167_v18 = vpack.c.bf16 %v166_v17, %v166_v17 }
 0x103   :  { %492 = vmatmul.mubr.bf16.vlgmr.msra.gmra.mxu1 %v167_v18 }
 0x1c3   :  { %v273_v28 = vpop.f32.mrf.mxu1 }
 0x1c4   :  { %v274_v29 = vadd.f32 %v424_v27, %v273_v28 }
 0x1c5   :  { %v493_v30 = vpop.f32.mrf.mxu1 }
 0x1c6   :  { %v433_v31 = vmul.f32 -1.442695, %v274_v29 }
 0x1c7   :  { %v276_v32 = vpop.f32.mrf.mxu1 }
 0x1c8   :  { %542 = vpow2.f32 %v433_v31 }
 0x1c9   :  { %v494_v33 = vpop.f32.mrf.mxu1 }
 0x1d5   :  { %v543_v34 = vpop.eup %542 }
 0x1d6   :  { %v282_v35 = vadd.f32 1.0, %v543_v34 }
 0x1d8   :  { %544 = vrcp.f32 %v282_v35 }
 0x1e5   :  { %v545_v36 = vpop.eup %544 }
 0x1e6   :  { %v285_v37 = vpack.c.bf16 %v545_v36, %v545_v36 }
 0x1e8   :  { %512 = vmatmul.mubr.bf16.vlgmr.msra.gmra.mxu0 %v285_v37 }
 0x2a8   :  { %v391_v39 = vpop.f32.mrf.mxu0 }
 0x2a9   :  { %v392_v40 = vadd.f32 %v434_v38, %v391_v39 }
 0x2aa   :  { %v513_v41 = vpop.f32.mrf.mxu0 }
 0x2ab   :  { %v443_v42 = vmul.f32 -1.442695, %v392_v40 }
 0x2ac   :  { %v394_v43 = vpop.f32.mrf.mxu0 }
 0x2ad   :  { %546 = vpow2.f32 %v443_v42 }
 0x2ae   :  { %v514_v44 = vpop.f32.mrf.mxu0 }
 0x2ba   :  { %v547_v45 = vpop.eup %546 }
 0x2bb   :  { %v400_v46 = vadd.f32 1.0, %v547_v45 }
 0x2bd   :  { %548 = vrcp.f32 %v400_v46 }
 0x2ca   :  { %v549_v47 = vpop.eup %548 }
 0x2cb   :  { %v403_v48 = vpack.c.bf16 %v549_v47, %v549_v47 }
 0x2cd   :  { %404 = vst [vmem:[#allocation10] sm:$0xf] %v403_v48 }
 0x2ce   :  { %641 = shalt.err (!%p638_p10)
}
 0x2cf   :  { %414 = dma.vmem_to_hbm [thread:$0]  %s412_s26, 64, %s765_s7, [#allocation4]  }
 0x2d0   :  { %656 = dma.done.wait [#allocation4], 64  }
 0x2d1   :  { %657 = vsyncadd [#allocation4], 4294967232 }
 0x2d2   :  { %418 = vsyncpa [#allocation3], 1 }
 0x2d3   :  { %419 = vsyncpa [#allocation6], 1 }
 0x2d4   :  { %420 = vsyncpa [#allocation9], 1 }
 0x2d5   :  { %421 = vsyncpa [#allocation4], 1 }

</bundles_post_ra>
